<compile_context>
chip_gen: v5e
topology: v5e:2x2
jax: 0.10.0
libtpu: 0.0.40
codegen_flags: <defaults>
</compile_context>

<pallas_src>
import jax
import jax.numpy as jnp
from jax.experimental import pallas as pl
from jax.experimental.pallas import tpu as pltpu


def _round_up(x, m):
    return ((x + m - 1) // m) * m


def _default_min_grid_steps():
    """>=2 grid steps on v7x so dimension_semantics=('parallel',) uses both TCs."""
    try:
        kind = jax.devices()[0].device_kind.lower()
    except Exception:
        return 1
    return 2 if ("v7" in kind or "tpu7" in kind) else 1


def _choose_batch_tile(b, block_batch, min_steps):
    """Balanced batch tile: multiple of 8 (single step) or 128 (multi step)."""
    b8 = _round_up(b, 8)
    n_steps = pl.cdiv(b8, block_batch)
    if b8 >= min_steps * 128:
        n_steps = max(n_steps, min_steps)
    if n_steps <= 1:
        return b8
    return _round_up(pl.cdiv(b8, n_steps), 128)


def _actor_critic_kernel(x_ref, w1_ref, b1_ref, w2_ref, b2_ref,
                         wh_ref, bh_ref, out_ref):
    # fc1 + ReLU  (MXU matmul, f32 accumulation; bias/ReLU in f32)
    x = x_ref[...].astype(w1_ref.dtype)
    h1 = jnp.dot(x, w1_ref[...], preferred_element_type=jnp.float32) + b1_ref[...]
    h1 = jnp.maximum(h1, 0.0).astype(w2_ref.dtype)

    # fc2 + ReLU
    h2 = jnp.dot(h1, w2_ref[...], preferred_element_type=jnp.float32) + b2_ref[...]
    h2 = jnp.maximum(h2, 0.0)                       # f32 [tb, 128]

    # Fused actor|critic head, computed transposed:
    #   out_t[h, b] = sum_k wh_t[h, k] * h2[b, k] + bh_t[h]
    # XLU transpose (free slot) + tiny MXU matmul -> lane-dense [8, tb] store.
    h2_t = h2.T.astype(wh_ref.dtype)                # [128, tb]
    out = jnp.dot(wh_ref[...], h2_t, preferred_element_type=jnp.float32) + bh_ref[...]
    out_ref[...] = out.astype(out_ref.dtype)


def actor_critic_forward(state, params, action_dim, *, block_batch=256,
                         min_grid_steps=None):
    """state: [B, state_dim]. Returns (logits [B, action_dim], value [B, 1])."""
    b, state_dim = state.shape
    hidden1 = params["w1"].shape[1]
    hidden2 = params["w2"].shape[1]
    head_rows = params["w_heads_t"].shape[0]        # round_up(action_dim + 1, 8)

    if min_grid_steps is None:
        min_grid_steps = _default_min_grid_steps()

    tb = _choose_batch_tile(b, block_batch, min_grid_steps)
    b_pad = _round_up(b, tb)
    if b_pad != b:
        state = jnp.pad(state, ((0, b_pad - b), (0, 0)))
    grid = (b_pad // tb,)

    itemsize = lambda a: a.size * a.dtype.itemsize
    flops = 2 * b_pad * (state_dim * hidden1 + hidden1 * hidden2
                         + hidden2 * head_rows)
    bytes_accessed = (itemsize(state)
                      + sum(itemsize(v) for v in params.values())
                      + head_rows * b_pad * 4)

    def call(single_buffer):
        def const_spec(shape):
            # VMEM-resident operand (fetched once); single-buffer when supported.
            if single_buffer:
                return pl.BlockSpec(shape, lambda i: (0, 0),
                                    pipeline_mode=pl.Buffered(1))
            return pl.BlockSpec(shape, lambda i: (0, 0))

        return pl.pallas_call(
            _actor_critic_kernel,
            out_shape=jax.ShapeDtypeStruct((head_rows, b_pad), jnp.float32),
            grid_spec=pltpu.PrefetchScalarGridSpec(
                num_scalar_prefetch=0,
                grid=grid,
                in_specs=[
                    pl.BlockSpec((tb, state_dim), lambda i: (i, 0)),   # state tile
                    const_spec((state_dim, hidden1)),                  # w1
                    const_spec((1, hidden1)),                          # b1
                    const_spec((hidden1, hidden2)),                    # w2
                    const_spec((1, hidden2)),                          # b2
                    const_spec((head_rows, hidden2)),                  # fused head W^T
                    const_spec((head_rows, 1)),                        # fused head bias
                ],
                out_specs=pl.BlockSpec((head_rows, tb), lambda i: (0, i)),
            ),
            compiler_params=pltpu.CompilerParams(
                dimension_semantics=("parallel",)),                    # v7x: 2 TCs
            cost_estimate=pl.CostEstimate(flops=flops, transcendentals=0,
                                          bytes_accessed=bytes_accessed),
        )(state,
          params["w1"], params["b1"],
          params["w2"], params["b2"],
          params["w_heads_t"], params["b_heads_t"])

    try:
        out_t = call(True)
    except Exception:
        # pipeline_mode=pl.Buffered(1) not supported on this jax version.
        out_t = call(False)

    logits = out_t[:action_dim, :b].T
    value = out_t[action_dim:action_dim + 1, :b].T
    return logits, value


def init_params(key, state_dim, action_dim, dtype=jnp.bfloat16):
    """Mirrors nn.Linear's U(-1/sqrt(fan_in), +1/sqrt(fan_in)) init.

    fc1/fc2 weights stored transposed [in, out] in `dtype`; the actor|critic
    heads are fused, stored [head_rows, 128] (PyTorch [out, in] orientation,
    zero-padded to 8 sublanes). Biases stay f32. bf16 is the fast default;
    pass dtype=jnp.float32 to match PyTorch f32 semantics exactly.
    """
    def linear(k, fan_in, fan_out):
        kw, kb = jax.random.split(k)
        bound = 1.0 / jnp.sqrt(float(fan_in))
        w = jax.random.uniform(kw, (fan_in, fan_out), jnp.float32, -bound, bound)
        b = jax.random.uniform(kb, (1, fan_out), jnp.float32, -bound, bound)
        return w, b

    k1, k2, k3, k4 = jax.random.split(key, 4)
    w1, b1 = linear(k1, state_dim, 256)
    w2, b2 = linear(k2, 256, 128)
    wa, ba = linear(k3, 128, action_dim)   # [128, action_dim]
    wc, bc = linear(k4, 128, 1)            # [128, 1]

    n_heads = action_dim + 1
    head_rows = _round_up(n_heads, 8)
    w_heads_t = jnp.zeros((head_rows, 128), jnp.float32)
    w_heads_t = (w_heads_t.at[:action_dim, :].set(wa.T)
                          .at[action_dim, :].set(wc[:, 0]))
    b_heads_t = jnp.zeros((head_rows, 1), jnp.float32)
    b_heads_t = (b_heads_t.at[:action_dim, 0].set(ba[0])
                          .at[action_dim, 0].set(bc[0, 0]))

    return dict(
        w1=w1.astype(dtype), b1=b1,
        w2=w2.astype(dtype), b2=b2,
        w_heads_t=w_heads_t.astype(dtype), b_heads_t=b_heads_t,
    )


def reference_forward(state, p, action_dim):
    """Pure-JAX reference mirroring the kernel's dtype flow."""
    x = state.astype(p["w1"].dtype)
    h1 = jnp.maximum(
        jnp.dot(x, p["w1"], preferred_element_type=jnp.float32) + p["b1"], 0.0)
    h1 = h1.astype(p["w2"].dtype)
    h2 = jnp.maximum(
        jnp.dot(h1, p["w2"], preferred_element_type=jnp.float32) + p["b2"], 0.0)
    h2_t = h2.T.astype(p["w_heads_t"].dtype)
    out_t = (jnp.dot(p["w_heads_t"], h2_t, preferred_element_type=jnp.float32)
             + p["b_heads_t"])
    return out_t[:action_dim, :].T, out_t[action_dim:action_dim + 1, :].T


if __name__ == "__main__":
    key = jax.random.PRNGKey(0)
    k_param, k_state, k_state_big = jax.random.split(key, 3)

    batch = 8
    state_dim = 32
    action_dim = 4

    state = jax.random.normal(k_state, (batch, state_dim), jnp.float32)

    # --- f32 weights: must match the reference tightly (PyTorch semantics) ---
    params_f32 = init_params(k_param, state_dim, action_dim, dtype=jnp.float32)
    logits, value = actor_critic_forward(state, params_f32, action_dim)
    jax.block_until_ready((logits, value))
    ref_logits, ref_value = reference_forward(state, params_f32, action_dim)
    assert logits.shape == (batch, action_dim)
    assert value.shape == (batch, 1)
    assert jnp.allclose(logits, ref_logits, atol=1e-5, rtol=1e-5)
    assert jnp.allclose(value, ref_value, atol=1e-5, rtol=1e-5)

    # --- default bf16 weights: native MXU path, halved traffic (looser tol) ---
    params_bf16 = init_params(k_param, state_dim, action_dim)
    logits16, value16 = actor_critic_forward(state, params_bf16, action_dim)
    jax.block_until_ready((logits16, value16))
    ref_l16, ref_v16 = reference_forward(state, params_bf16, action_dim)
    assert jnp.allclose(logits16, ref_l16, atol=2e-2, rtol=2e-2)
    assert jnp.allclose(value16, ref_v16, atol=2e-2, rtol=2e-2)

    # --- multi-tile path: grid > 1, 128-aligned tiles, padded last tile ---
    big_b = 260
    state_big = jax.random.normal(k_state_big, (big_b, state_dim), jnp.float32)
    lb, vb = actor_critic_forward(state_big, params_f32, action_dim,
                                  block_batch=128)
    jax.block_until_ready((lb, vb))
    rl, rv = reference_forward(state_big, params_f32, action_dim)
    assert lb.shape == (big_b, action_dim) and vb.shape == (big_b, 1)
    assert jnp.allclose(lb, rl, atol=1e-5, rtol=1e-5)
    assert jnp.allclose(vb, rv, atol=1e-5, rtol=1e-5)

    print("KERNEL_OK")
</pallas_src>

<mosaic_0001>
module attributes {stable_mosaic.version = 11 : i64} {
  func.func @_actor_critic_kernel(%arg0: i32, %arg1: memref<8x32xf32, #tpu.memory_space<vmem>>, %arg2: memref<32x256xf32, #tpu.memory_space<vmem>>, %arg3: memref<1x256xf32, #tpu.memory_space<vmem>>, %arg4: memref<256x128xf32, #tpu.memory_space<vmem>>, %arg5: memref<1x128xf32, #tpu.memory_space<vmem>>, %arg6: memref<8x128xf32, #tpu.memory_space<vmem>>, %arg7: memref<8x1xf32, #tpu.memory_space<vmem>>, %arg8: memref<8x8xf32, #tpu.memory_space<vmem>>) attributes {dimension_semantics = [#tpu.dimension_semantics<parallel>], iteration_bounds = array<i64: 1>, scalar_prefetch = 0 : i64, scratch_operands = 0 : i64, tpu.core_type = #tpu.core_type<tc>, window_params = [{transform_indices = @transform_0, window_bounds = array<i64: 8, 32>}, {pipeline_mode = #tpu.pipeline_mode<synchronous>, transform_indices = @transform_1, window_bounds = array<i64: 32, 256>}, {pipeline_mode = #tpu.pipeline_mode<synchronous>, transform_indices = @transform_2, window_bounds = array<i64: 1, 256>}, {pipeline_mode = #tpu.pipeline_mode<synchronous>, transform_indices = @transform_3, window_bounds = array<i64: 256, 128>}, {pipeline_mode = #tpu.pipeline_mode<synchronous>, transform_indices = @transform_4, window_bounds = array<i64: 1, 128>}, {pipeline_mode = #tpu.pipeline_mode<synchronous>, transform_indices = @transform_5, window_bounds = array<i64: 8, 128>}, {pipeline_mode = #tpu.pipeline_mode<synchronous>, transform_indices = @transform_6, window_bounds = array<i64: 8, 1>}, {transform_indices = @transform_7, window_bounds = array<i64: 8, 8>}]} {
    %c0 = arith.constant 0 : index
    %c0_0 = arith.constant 0 : index
    %0 = vector.load %arg1[%c0, %c0_0] : memref<8x32xf32, #tpu.memory_space<vmem>>, vector<8x32xf32>
    %c0_1 = arith.constant 0 : index
    %c0_2 = arith.constant 0 : index
    %1 = vector.load %arg2[%c0_1, %c0_2] : memref<32x256xf32, #tpu.memory_space<vmem>>, vector<32x256xf32>
    %cst = arith.constant dense<0.000000e+00> : vector<8x256xf32>
    %2 = tpu.matmul %0, %1, %cst {dimension_numbers = #tpu.dot_dimension_numbers<[1], [0], [0], [1], [0, 0, 1, 1], [], []>} : vector<8x32xf32>, vector<32x256xf32>, vector<8x256xf32> -> vector<8x256xf32>
    %c0_3 = arith.constant 0 : index
    %c0_4 = arith.constant 0 : index
    %3 = vector.load %arg3[%c0_3, %c0_4] : memref<1x256xf32, #tpu.memory_space<vmem>>, vector<1x256xf32>
    %4 = vector.broadcast %3 : vector<1x256xf32> to vector<8x256xf32>
    %5 = arith.addf %2, %4 : vector<8x256xf32>
    %cst_5 = arith.constant 0.000000e+00 : f32
    %6 = vector.broadcast %cst_5 : f32 to vector<8x256xf32>
    %7 = arith.maximumf %5, %6 : vector<8x256xf32>
    %c0_6 = arith.constant 0 : index
    %c0_7 = arith.constant 0 : index
    %8 = vector.load %arg4[%c0_6, %c0_7] : memref<256x128xf32, #tpu.memory_space<vmem>>, vector<256x128xf32>
    %cst_8 = arith.constant dense<0.000000e+00> : vector<8x128xf32>
    %9 = tpu.matmul %7, %8, %cst_8 {dimension_numbers = #tpu.dot_dimension_numbers<[1], [0], [0], [1], [0, 0, 1, 1], [], []>} : vector<8x256xf32>, vector<256x128xf32>, vector<8x128xf32> -> vector<8x128xf32>
    %c0_9 = arith.constant 0 : index
    %c0_10 = arith.constant 0 : index
    %10 = vector.load %arg5[%c0_9, %c0_10] : memref<1x128xf32, #tpu.memory_space<vmem>>, vector<1x128xf32>
    %11 = vector.broadcast %10 : vector<1x128xf32> to vector<8x128xf32>
    %12 = arith.addf %9, %11 : vector<8x128xf32>
    %cst_11 = arith.constant 0.000000e+00 : f32
    %13 = vector.broadcast %cst_11 : f32 to vector<8x128xf32>
    %14 = arith.maximumf %12, %13 : vector<8x128xf32>
    %15 = tpu.transpose %14, [1, 0] : vector<8x128xf32> -> vector<128x8xf32>
    %c0_12 = arith.constant 0 : index
    %c0_13 = arith.constant 0 : index
    %16 = vector.load %arg6[%c0_12, %c0_13] : memref<8x128xf32, #tpu.memory_space<vmem>>, vector<8x128xf32>
    %cst_14 = arith.constant dense<0.000000e+00> : vector<8x8xf32>
    %17 = tpu.matmul %16, %15, %cst_14 {dimension_numbers = #tpu.dot_dimension_numbers<[1], [0], [0], [1], [0, 0, 1, 1], [], []>} : vector<8x128xf32>, vector<128x8xf32>, vector<8x8xf32> -> vector<8x8xf32>
    %c0_15 = arith.constant 0 : index
    %c0_16 = arith.constant 0 : index
    %18 = vector.load %arg7[%c0_15, %c0_16] : memref<8x1xf32, #tpu.memory_space<vmem>>, vector<8x1xf32>
    %19 = vector.broadcast %18 : vector<8x1xf32> to vector<8x8xf32>
    %20 = arith.addf %17, %19 : vector<8x8xf32>
    %c0_17 = arith.constant 0 : index
    %c0_18 = arith.constant 0 : index
    %21 = vector.load %arg8[%c0_17, %c0_18] : memref<8x8xf32, #tpu.memory_space<vmem>>, vector<8x8xf32>
    tpu.vector_store %arg8[%c0_17, %c0_18], %20 {strides = array<i32>} : memref<8x8xf32, #tpu.memory_space<vmem>>, vector<8x8xf32>,
    return
  }
  func.func @transform_0(%arg0: i32) -> (i32, i32) {
    %c0_i32 = arith.constant 0 : i32
    %c0_i32_0 = arith.constant 0 : i32
    return %arg0, %c0_i32 : i32, i32
  }
  func.func @transform_1(%arg0: i32) -> (i32, i32) {
    %c0_i32 = arith.constant 0 : i32
    %c0_i32_0 = arith.constant 0 : i32
    %c0_i32_1 = arith.constant 0 : i32
    return %c0_i32, %c0_i32_0 : i32, i32
  }
  func.func @transform_2(%arg0: i32) -> (i32, i32) {
    %c0_i32 = arith.constant 0 : i32
    %c0_i32_0 = arith.constant 0 : i32
    %c0_i32_1 = arith.constant 0 : i32
    return %c0_i32, %c0_i32_0 : i32, i32
  }
  func.func @transform_3(%arg0: i32) -> (i32, i32) {
    %c0_i32 = arith.constant 0 : i32
    %c0_i32_0 = arith.constant 0 : i32
    %c0_i32_1 = arith.constant 0 : i32
    return %c0_i32, %c0_i32_0 : i32, i32
  }
  func.func @transform_4(%arg0: i32) -> (i32, i32) {
    %c0_i32 = arith.constant 0 : i32
    %c0_i32_0 = arith.constant 0 : i32
    %c0_i32_1 = arith.constant 0 : i32
    return %c0_i32, %c0_i32_0 : i32, i32
  }
  func.func @transform_5(%arg0: i32) -> (i32, i32) {
    %c0_i32 = arith.constant 0 : i32
    %c0_i32_0 = arith.constant 0 : i32
    %c0_i32_1 = arith.constant 0 : i32
    return %c0_i32, %c0_i32_0 : i32, i32
  }
  func.func @transform_6(%arg0: i32) -> (i32, i32) {
    %c0_i32 = arith.constant 0 : i32
    %c0_i32_0 = arith.constant 0 : i32
    %c0_i32_1 = arith.constant 0 : i32
    return %c0_i32, %c0_i32_0 : i32, i32
  }
  func.func @transform_7(%arg0: i32) -> (i32, i32) {
    %c0_i32 = arith.constant 0 : i32
    %c0_i32_0 = arith.constant 0 : i32
    return %c0_i32, %arg0 : i32, i32
  }
}

module attributes {stable_mosaic.version = 11 : i64} {
  func.func @_actor_critic_kernel(%arg0: i32, %arg1: memref<8x32xf32, #tpu.memory_space<vmem>>, %arg2: memref<32x256xf32, #tpu.memory_space<vmem>>, %arg3: memref<1x256xf32, #tpu.memory_space<vmem>>, %arg4: memref<256x128xf32, #tpu.memory_space<vmem>>, %arg5: memref<1x128xf32, #tpu.memory_space<vmem>>, %arg6: memref<8x128xf32, #tpu.memory_space<vmem>>, %arg7: memref<8x1xf32, #tpu.memory_space<vmem>>, %arg8: memref<8x8xf32, #tpu.memory_space<vmem>>) attributes {dimension_semantics = [#tpu.dimension_semantics<parallel>], iteration_bounds = array<i64: 1>, scalar_prefetch = 0 : i64, scratch_operands = 0 : i64, tpu.core_type = #tpu.core_type<tc>, window_params = [{transform_indices = @transform_0, window_bounds = array<i64: 8, 32>}, {pipeline_mode = #tpu.pipeline_mode<synchronous>, transform_indices = @transform_1, window_bounds = array<i64: 32, 256>}, {pipeline_mode = #tpu.pipeline_mode<synchronous>, transform_indices = @transform_2, window_bounds = array<i64: 1, 256>}, {pipeline_mode = #tpu.pipeline_mode<synchronous>, transform_indices = @transform_3, window_bounds = array<i64: 256, 128>}, {pipeline_mode = #tpu.pipeline_mode<synchronous>, transform_indices = @transform_4, window_bounds = array<i64: 1, 128>}, {pipeline_mode = #tpu.pipeline_mode<synchronous>, transform_indices = @transform_5, window_bounds = array<i64: 8, 128>}, {pipeline_mode = #tpu.pipeline_mode<synchronous>, transform_indices = @transform_6, window_bounds = array<i64: 8, 1>}, {transform_indices = @transform_7, window_bounds = array<i64: 8, 8>}]} {
    %c0 = arith.constant 0 : index
    %c0_0 = arith.constant 0 : index
    %0 = vector.load %arg1[%c0, %c0_0] : memref<8x32xf32, #tpu.memory_space<vmem>>, vector<8x32xf32>
    %c0_1 = arith.constant 0 : index
    %c0_2 = arith.constant 0 : index
    %1 = vector.load %arg2[%c0_1, %c0_2] : memref<32x256xf32, #tpu.memory_space<vmem>>, vector<32x256xf32>
    %cst = arith.constant dense<0.000000e+00> : vector<8x256xf32>
    %2 = tpu.matmul %0, %1, %cst {dimension_numbers = #tpu.dot_dimension_numbers<[1], [0], [0], [1], [0, 0, 1, 1], [], []>} : vector<8x32xf32>, vector<32x256xf32>, vector<8x256xf32> -> vector<8x256xf32>
    %c0_3 = arith.constant 0 : index
    %c0_4 = arith.constant 0 : index
    %3 = vector.load %arg3[%c0_3, %c0_4] : memref<1x256xf32, #tpu.memory_space<vmem>>, vector<1x256xf32>
    %4 = vector.broadcast %3 : vector<1x256xf32> to vector<8x256xf32>
    %5 = arith.addf %2, %4 : vector<8x256xf32>
    %cst_5 = arith.constant 0.000000e+00 : f32
    %6 = vector.broadcast %cst_5 : f32 to vector<8x256xf32>
    %7 = arith.maximumf %5, %6 : vector<8x256xf32>
    %c0_6 = arith.constant 0 : index
    %c0_7 = arith.constant 0 : index
    %8 = vector.load %arg4[%c0_6, %c0_7] : memref<256x128xf32, #tpu.memory_space<vmem>>, vector<256x128xf32>
    %cst_8 = arith.constant dense<0.000000e+00> : vector<8x128xf32>
    %9 = tpu.matmul %7, %8, %cst_8 {dimension_numbers = #tpu.dot_dimension_numbers<[1], [0], [0], [1], [0, 0, 1, 1], [], []>} : vector<8x256xf32>, vector<256x128xf32>, vector<8x128xf32> -> vector<8x128xf32>
    %c0_9 = arith.constant 0 : index
    %c0_10 = arith.constant 0 : index
    %10 = vector.load %arg5[%c0_9, %c0_10] : memref<1x128xf32, #tpu.memory_space<vmem>>, vector<1x128xf32>
    %11 = vector.broadcast %10 : vector<1x128xf32> to vector<8x128xf32>
    %12 = arith.addf %9, %11 : vector<8x128xf32>
    %cst_11 = arith.constant 0.000000e+00 : f32
    %13 = vector.broadcast %cst_11 : f32 to vector<8x128xf32>
    %14 = arith.maximumf %12, %13 : vector<8x128xf32>
    %15 = tpu.transpose %14, [1, 0] : vector<8x128xf32> -> vector<128x8xf32>
    %c0_12 = arith.constant 0 : index
    %c0_13 = arith.constant 0 : index
    %16 = vector.load %arg6[%c0_12, %c0_13] : memref<8x128xf32, #tpu.memory_space<vmem>>, vector<8x128xf32>
    %cst_14 = arith.constant dense<0.000000e+00> : vector<8x8xf32>
    %17 = tpu.matmul %16, %15, %cst_14 {dimension_numbers = #tpu.dot_dimension_numbers<[1], [0], [0], [1], [0, 0, 1, 1], [], []>} : vector<8x128xf32>, vector<128x8xf32>, vector<8x8xf32> -> vector<8x8xf32>
    %c0_15 = arith.constant 0 : index
    %c0_16 = arith.constant 0 : index
    %18 = vector.load %arg7[%c0_15, %c0_16] : memref<8x1xf32, #tpu.memory_space<vmem>>, vector<8x1xf32>
    %19 = vector.broadcast %18 : vector<8x1xf32> to vector<8x8xf32>
    %20 = arith.addf %17, %19 : vector<8x8xf32>
    %c0_17 = arith.constant 0 : index
    %c0_18 = arith.constant 0 : index
    %21 = vector.load %arg8[%c0_17, %c0_18] : memref<8x8xf32, #tpu.memory_space<vmem>>, vector<8x8xf32>
    tpu.vector_store %arg8[%c0_17, %c0_18], %20 {strides = array<i32>} : memref<8x8xf32, #tpu.memory_space<vmem>>, vector<8x8xf32>,
    return
  }
  func.func @transform_0(%arg0: i32) -> (i32, i32) {
    %c0_i32 = arith.constant 0 : i32
    %c0_i32_0 = arith.constant 0 : i32
    return %arg0, %c0_i32 : i32, i32
  }
  func.func @transform_1(%arg0: i32) -> (i32, i32) {
    %c0_i32 = arith.constant 0 : i32
    %c0_i32_0 = arith.constant 0 : i32
    %c0_i32_1 = arith.constant 0 : i32
    return %c0_i32, %c0_i32_0 : i32, i32
  }
  func.func @transform_2(%arg0: i32) -> (i32, i32) {
    %c0_i32 = arith.constant 0 : i32
    %c0_i32_0 = arith.constant 0 : i32
    %c0_i32_1 = arith.constant 0 : i32
    return %c0_i32, %c0_i32_0 : i32, i32
  }
  func.func @transform_3(%arg0: i32) -> (i32, i32) {
    %c0_i32 = arith.constant 0 : i32
    %c0_i32_0 = arith.constant 0 : i32
    %c0_i32_1 = arith.constant 0 : i32
    return %c0_i32, %c0_i32_0 : i32, i32
  }
  func.func @transform_4(%arg0: i32) -> (i32, i32) {
    %c0_i32 = arith.constant 0 : i32
    %c0_i32_0 = arith.constant 0 : i32
    %c0_i32_1 = arith.constant 0 : i32
    return %c0_i32, %c0_i32_0 : i32, i32
  }
  func.func @transform_5(%arg0: i32) -> (i32, i32) {
    %c0_i32 = arith.constant 0 : i32
    %c0_i32_0 = arith.constant 0 : i32
    %c0_i32_1 = arith.constant 0 : i32
    return %c0_i32, %c0_i32_0 : i32, i32
  }
  func.func @transform_6(%arg0: i32) -> (i32, i32) {
    %c0_i32 = arith.constant 0 : i32
    %c0_i32_0 = arith.constant 0 : i32
    %c0_i32_1 = arith.constant 0 : i32
    return %c0_i32, %c0_i32_0 : i32, i32
  }
  func.func @transform_7(%arg0: i32) -> (i32, i32) {
    %c0_i32 = arith.constant 0 : i32
    %c0_i32_0 = arith.constant 0 : i32
    return %c0_i32, %arg0 : i32, i32
  }
}

</mosaic_0001>

<bundles_post_ra>
// kernel: tpu_custom_call.1
= control target key start
LH: loop header
LB: loop body
LE: loop exit
PB: predicated region body
PF: predicated region fallthrough
CT: control target
= control target key end

     0   :  { %12 = vsyncpa [#allocation3], 0  ;;  %s445_s0 = inlined_call_operand.vmem [shape: f32[8,32], index: 0, kind: input, shape index: {}]   ;;  %s446_s1 = inlined_call_operand.hbm [shape: f32[32,256], index: 1, kind: input, shape index: {}]   ;;  %s447_s2 = inlined_call_operand.vmem [shape: f32[1,256], index: 2, kind: input, shape index: {}]   ;;  %s448_s3 = inlined_call_operand.hbm [shape: f32[256,128], index: 3, kind: input, shape index: {}]   ;;  %s449_s4 = inlined_call_operand.vmem [shape: f32[1,128], index: 4, kind: input, shape index: {}]   ;;  %s450_s5 = inlined_call_operand.hbm [shape: f32[8,128], index: 5, kind: input, shape index: {}]   ;;  %s451_s6 = inlined_call_operand.vmem [shape: f32[8,1], index: 6, kind: input, shape index: {}]   ;;  %s452_s7 = inlined_call_operand.hbm [shape: f32[8,8], index: 7, kind: output, shape index: {}]  }
   0x1   :  { %13 = vsyncpa [#allocation6], 0  ;;  %s36_s26 = sshll.u32 %s448_s3, 4  ;;  %s37_s26 = int_to_ptr.hbm [resolvable:$true] %s36_s26 }
   0x2   :  { %14 = vsyncpa [#allocation4], 0  ;;  %s372_s27 = smov [#allocation5]   ;;  %s21_s8 = sshll.u32 %s446_s1, 4  ;;  %s22_s8 = int_to_ptr.hbm [resolvable:$true] %s21_s8 }
   0x3   :  { %s38_s28 = sshll.u32 %s372_s27, 4  ;;  %s373_s9 = smov 128   ;;  %s39_s28 = int_to_ptr.vmem [resolvable:$true] %s38_s28 }
   0x4   :  { %s374_s10 = smov 8   ;;  %s375_s11 = smov [#allocation2]  }
   0x5   :  { %44 = dma.hbm_to_vmem [thread:$0]  %s37_s26, 4096, %s39_s28, [#allocation6], %s373_s9, %s373_s9, %s374_s10  }
   0x6   :  { %s23_s12 = sshll.u32 %s375_s11, 4  ;;  %s376_s13 = smov 256   ;;  %s24_s12 = int_to_ptr.vmem [resolvable:$true] %s23_s12 }
   0x7   :  { %s377_s14 = smov 16   ;;  %s52_s16 = sshll.u32 %s450_s5, 4  ;;  %s53_s16 = int_to_ptr.hbm [resolvable:$true] %s52_s16 }
   0x8   :  { %29 = dma.hbm_to_vmem [thread:$0]  %s22_s8, 1024, %s24_s12, [#allocation3], %s376_s13, %s376_s13, %s377_s14  }
   0x9   :  { %s378_s17 = smov [#allocation7]  }
   0xa   :  { %s54_s18 = sshll.u32 %s378_s17, 4  ;;  %s55_s18 = int_to_ptr.vmem [resolvable:$true] %s54_s18 }
   0xb   :  { %57 = dma.hbm_to_vmem [thread:$0]  %s53_s16, 128, %s55_s18, [#allocation6]  }
   0xc   :  { %366 = dma.done.wait [#allocation3], 1024  }
   0xd   :  { %367 = vsyncadd [#allocation3], 4294966272 }
   0xe   :  { %368 = dma.done.wait [#allocation6], 4224  }
   0xf   :  { %369 = vsyncadd [#allocation6], 4294963072  ;;  %v79_v0 = vld [vmem:[#allocation2 + $0x30] sm:$0xff]  ;;  %v77_v1 = vld [vmem:[#allocation2 + $0x20] sm:$0xff]  ;;  %vm87_vm0 = vcmask 261120   ;;  %v379_v51 = vmov 0  }
  0x10   :  { %v80_v2 = vld [vmem:[#allocation2 + $0x38] sm:$0xff]  ;;  %103 = vmatpush.msra.mxu0 %v79_v0  ;;  %v78_v3 = vld [vmem:[#allocation2 + $0x28] sm:$0xff]  ;;  %v75_v4 = vld [vmem:[#allocation2 + $0x10] sm:$0xff]  ;;  %268 = vset.pattern.permute.xlu0 %v379_v51  ;;  %s246_s26 = sshll.u32 %s452_s7, 4  ;;  %vm237_vm1 = vcmask 64512   ;;  %s247_s26 = int_to_ptr.hbm [resolvable:$true] %s246_s26 }
  0x11   :  { %123 = vmatpush.msra.mxu1 %v80_v2  ;;  %v76_v5 = vld [vmem:[#allocation2 + $0x18] sm:$0xff]  ;;  %v147_v7 = vld [vmem:[#allocation5 + $0x70] sm:$0xff]  ;;  %v73_v9 = vld [vmem:[#allocation2] sm:$0xff] }
  0x12   :  { %104 = vmatpush.msra.mxu0 %v77_v1  ;;  %v148_v6 = vld [vmem:[#allocation5 + $0x78] sm:$0xff]  ;;  %v74_v10 = vld [vmem:[#allocation2 + $0x8] sm:$0xff]  ;;  %v163_v11 = vld [vmem:[#allocation5 + $0xf0] sm:$0xff] }
  0x13   :  { %124 = vmatpush.msra.mxu1 %v78_v3  ;;  %v164_v8 = vld [vmem:[#allocation5 + $0xf8] sm:$0xff]  ;;  %169 = vmatpush.msra.mxu2 %v148_v6  ;;  %v72_v12 = vld [vmem:[%s445_s0] sm:$0xff]  ;;  %v146_v13 = vld [vmem:[#allocation5 + $0x68] sm:$0xff] }
  0x14   :  { %189 = vmatpush.msra.mxu3 %v164_v8  ;;  %105 = vmatpush.msra.mxu0 %v75_v4  ;;  %v162_v14 = vld [vmem:[#allocation5 + $0xe8] sm:$0xff]  ;;  %v145_v15 = vld [vmem:[#allocation5 + $0x60] sm:$0xff]  ;;  %v144_v17 = vld [vmem:[#allocation5 + $0x58] sm:$0xff] }
  0x15   :  { %125 = vmatpush.msra.mxu1 %v76_v5  ;;  %170 = vmatpush.msra.mxu2 %v147_v7  ;;  %v161_v16 = vld [vmem:[#allocation5 + $0xe0] sm:$0xff]  ;;  %v160_v18 = vld [vmem:[#allocation5 + $0xd8] sm:$0xff]  ;;  %v143_v19 = vld [vmem:[#allocation5 + $0x50] sm:$0xff] }
  0x16   :  { %190 = vmatpush.msra.mxu3 %v163_v11  ;;  %106 = vmatpush.msra.mxu0 %v73_v9  ;;  %v159_v20 = vld [vmem:[#allocation5 + $0xd0] sm:$0xff]  ;;  %v142_v21 = vld [vmem:[#allocation5 + $0x48] sm:$0xff]  ;;  %v141_v23 = vld [vmem:[#allocation5 + $0x40] sm:$0xff] }
  0x17   :  { %126 = vmatpush.msra.mxu1 %v74_v10  ;;  %257 = vmatmul.msk.f32.vlgmr.msra.gmra.mxu0 %vm87_vm0, %v72_v12  ;;  %v158_v22 = vld [vmem:[#allocation5 + $0xc8] sm:$0xff]  ;;  %v157_v24 = vld [vmem:[#allocation5 + $0xc0] sm:$0xff]  ;;  %v140_v25 = vld [vmem:[#allocation5 + $0x38] sm:$0xff] }
  0x18   :  { %258 = vmatmul.msk.f32.vlgmr.msra.gmra.mxu1 %vm87_vm0, %v72_v12  ;;  %171 = vmatpush.msra.mxu2 %v146_v13  ;;  %v156_v26 = vld [vmem:[#allocation5 + $0xb8] sm:$0xff]  ;;  %v139_v27 = vld [vmem:[#allocation5 + $0x30] sm:$0xff]  ;;  %v138_v29 = vld [vmem:[#allocation5 + $0x28] sm:$0xff] }
  0x19   :  { %191 = vmatpush.msra.mxu3 %v162_v14  ;;  %v155_v28 = vld [vmem:[#allocation5 + $0xb0] sm:$0xff]  ;;  %v154_v30 = vld [vmem:[#allocation5 + $0xa8] sm:$0xff]  ;;  %v137_v31 = vld [vmem:[#allocation5 + $0x20] sm:$0xff] }
  0x1a   :  { %172 = vmatpush.msra.mxu2 %v145_v15  ;;  %v153_v32 = vld [vmem:[#allocation5 + $0xa0] sm:$0xff]  ;;  %v136_v33 = vld [vmem:[#allocation5 + $0x18] sm:$0xff]  ;;  %v135_v34 = vld [vmem:[#allocation5 + $0x10] sm:$0xff] }
  0x1b   :  { %192 = vmatpush.msra.mxu3 %v161_v16  ;;  %v152_v35 = vld [vmem:[#allocation5 + $0x98] sm:$0xff]  ;;  %v134_v36 = vld [vmem:[#allocation5 + $0x8] sm:$0xff]  ;;  %v151_v37 = vld [vmem:[#allocation5 + $0x90] sm:$0xff] }
  0x1c   :  { %173 = vmatpush.msra.mxu2 %v144_v17  ;;  %v133_v38 = vld [vmem:[#allocation5] sm:$0xff]  ;;  %v150_v39 = vld [vmem:[#allocation5 + $0x88] sm:$0xff] }
  0x1d   :  { %193 = vmatpush.msra.mxu3 %v160_v18  ;;  %v149_v40 = vld [vmem:[#allocation5 + $0x80] sm:$0xff] }
  0x1e   :  { %174 = vmatpush.msra.mxu2 %v143_v19  ;;  %v81_v41 = vld [vmem:[%s447_s2] sm:$0x3]  ;;  %s380_s2 = smov [#allocation8]  }
  0x1f   :  { %194 = vmatpush.msra.mxu3 %v159_v20  ;;  %v83_v42 = vperm.slane %v81_v41, 0  ;;  %v84_v43 = vperm.slane %v81_v41, 1  ;;  %v211_v50 = vld [vmem:[%s451_s6] sm:$0xff]  ;;  %s244_s24 = sshll.u32 %s380_s2, 4  ;;  %s245_s24 = int_to_ptr.vmem [resolvable:$true] %s244_s24 }
  0x20   :  { %175 = vmatpush.msra.mxu2 %v142_v21  ;;  %214 = vperm.xlu0 %268, %v211_v50   ;;  %v269_v52 = vld [vmem:[%s449_s4] ss:$0 sm:$0xff] }
  0x21   :  { %195 = vmatpush.msra.mxu3 %v158_v22  ;;  %v210_v58 = vld [vmem:[#allocation7] sm:$0xff] }
  0x22   :  { %176 = vmatpush.msra.mxu2 %v141_v23 }
  0x23   :  { %196 = vmatpush.msra.mxu3 %v157_v24 }
  0x24   :  { %177 = vmatpush.msra.mxu2 %v140_v25 }
  0x25   :  { %197 = vmatpush.msra.mxu3 %v156_v26 }
  0x26   :  { %178 = vmatpush.msra.mxu2 %v139_v27 }
  0x27   :  { %198 = vmatpush.msra.mxu3 %v155_v28 }
  0x28   :  { %179 = vmatpush.msra.mxu2 %v138_v29 }
  0x29   :  { %199 = vmatpush.msra.mxu3 %v154_v30 }
  0x2a   :  { %180 = vmatpush.msra.mxu2 %v137_v31 }
  0x2b   :  { %200 = vmatpush.msra.mxu3 %v153_v32 }
  0x2c   :  { %181 = vmatpush.msra.mxu2 %v136_v33 }
  0x2d   :  { %201 = vmatpush.msra.mxu3 %v152_v35 }
  0x2e   :  { %182 = vmatpush.msra.mxu2 %v135_v34 }
  0x2f   :  { %202 = vmatpush.msra.mxu3 %v151_v37 }
  0x30   :  { %183 = vmatpush.msra.mxu2 %v134_v36 }
  0x31   :  { %203 = vmatpush.msra.mxu3 %v150_v39 }
  0x32   :  { %184 = vmatpush.msra.mxu2 %v133_v38 }
  0x33   :  { %204 = vmatpush.msra.mxu3 %v149_v40 }
  0x92   :  { %v215_v59 = vpop.permute.xlu0 %214 }
  0x94   :  { %v108_v44 = vpop.f32.mrf.mxu0 }
  0x95   :  { %v128_v45 = vpop.f32.mrf.mxu1  ;;  %v109_v46 = vadd.f32 %v108_v44, %v83_v42 }
  0x96   :  { %v129_v47 = vadd.f32 %v128_v45, %v84_v43 }
  0x97   :  { %v131_v48 = vmax.f32 %v109_v46, 0.0 }
  0x98   :  { %v132_v49 = vmax.f32 %v129_v47, 0.0 }
  0x99   :  { %185 = vmatmul.f32.vlgmr.msra.gmra.mxu2 %v131_v48 }
  0x9a   :  { %205 = vmatmul.f32.vlgmr.msra.gmra.mxu3 %v132_v49 }
 0x11c   :  { %v186_v53 = vpop.f32.mrf.mxu2 }
 0x11d   :  { %v206_v54 = vpop.f32.mrf.mxu3  ;;  %v187_v55 = vadd.f32 %v269_v52, %v186_v53 }
 0x11f   :  { %v207_v56 = vadd.f32 %v206_v54, %v187_v55 }
 0x121   :  { %v209_v57 = vmax.f32 %v207_v56, 0.0 }
 0x123   :  { %232 = vmatpush.xpose.msrb.mxu0 %v209_v57 }
 0x126   :  { %233 = vmatmul.f32.vlgmr.msrb.gmra.mxu0 %v210_v58 }
 0x1a3   :  { %v234_v60 = vpop.f32.mrf.mxu0 }
 0x1a4   :  { %v235_v61 = vadd.f32 %v234_v60, %v215_v59 }
 0x1a6   :  { %238 = vst.msk [vmem:[#allocation8] sm:$0xff] %vm237_vm1, %v235_v61 }
 0x1a7   :  { %249 = dma.vmem_to_hbm [thread:$0]  %s245_s24, 128, %s247_s26, [#allocation4]  }
 0x1a8   :  { %370 = dma.done.wait [#allocation4], 128  }
 0x1a9   :  { %371 = vsyncadd [#allocation4], 4294967168 }
 0x1aa   :  { %254 = vsyncpa [#allocation3], 1 }
 0x1ab   :  { %255 = vsyncpa [#allocation6], 1 }
 0x1ac   :  { %256 = vsyncpa [#allocation4], 1 }

// kernel: tpu_custom_call.1
= control target key start
LH: loop header
LB: loop body
LE: loop exit
PB: predicated region body
PF: predicated region fallthrough
CT: control target
= control target key end

     0   :  { %12 = vsyncpa [#allocation3], 0  ;;  %s445_s0 = inlined_call_operand.vmem [shape: f32[8,32], index: 0, kind: input, shape index: {}]   ;;  %s446_s1 = inlined_call_operand.hbm [shape: f32[32,256], index: 1, kind: input, shape index: {}]   ;;  %s447_s2 = inlined_call_operand.vmem [shape: f32[1,256], index: 2, kind: input, shape index: {}]   ;;  %s448_s3 = inlined_call_operand.hbm [shape: f32[256,128], index: 3, kind: input, shape index: {}]   ;;  %s449_s4 = inlined_call_operand.vmem [shape: f32[1,128], index: 4, kind: input, shape index: {}]   ;;  %s450_s5 = inlined_call_operand.hbm [shape: f32[8,128], index: 5, kind: input, shape index: {}]   ;;  %s451_s6 = inlined_call_operand.vmem [shape: f32[8,1], index: 6, kind: input, shape index: {}]   ;;  %s452_s7 = inlined_call_operand.hbm [shape: f32[8,8], index: 7, kind: output, shape index: {}]  }
   0x1   :  { %13 = vsyncpa [#allocation6], 0  ;;  %s36_s26 = sshll.u32 %s448_s3, 4  ;;  %s37_s26 = int_to_ptr.hbm [resolvable:$true] %s36_s26 }
   0x2   :  { %14 = vsyncpa [#allocation4], 0  ;;  %s372_s27 = smov [#allocation5]   ;;  %s21_s8 = sshll.u32 %s446_s1, 4  ;;  %s22_s8 = int_to_ptr.hbm [resolvable:$true] %s21_s8 }
   0x3   :  { %s38_s28 = sshll.u32 %s372_s27, 4  ;;  %s373_s9 = smov 128   ;;  %s39_s28 = int_to_ptr.vmem [resolvable:$true] %s38_s28 }
   0x4   :  { %s374_s10 = smov 8   ;;  %s375_s11 = smov [#allocation2]  }
   0x5   :  { %44 = dma.hbm_to_vmem [thread:$0]  %s37_s26, 4096, %s39_s28, [#allocation6], %s373_s9, %s373_s9, %s374_s10  }
   0x6   :  { %s23_s12 = sshll.u32 %s375_s11, 4  ;;  %s376_s13 = smov 256   ;;  %s24_s12 = int_to_ptr.vmem [resolvable:$true] %s23_s12 }
   0x7   :  { %s377_s14 = smov 16   ;;  %s52_s16 = sshll.u32 %s450_s5, 4  ;;  %s53_s16 = int_to_ptr.hbm [resolvable:$true] %s52_s16 }
   0x8   :  { %29 = dma.hbm_to_vmem [thread:$0]  %s22_s8, 1024, %s24_s12, [#allocation3], %s376_s13, %s376_s13, %s377_s14  }
   0x9   :  { %s378_s17 = smov [#allocation7]  }
   0xa   :  { %s54_s18 = sshll.u32 %s378_s17, 4  ;;  %s55_s18 = int_to_ptr.vmem [resolvable:$true] %s54_s18 }
   0xb   :  { %57 = dma.hbm_to_vmem [thread:$0]  %s53_s16, 128, %s55_s18, [#allocation6]  }
   0xc   :  { %366 = dma.done.wait [#allocation3], 1024  }
   0xd   :  { %367 = vsyncadd [#allocation3], 4294966272 }
   0xe   :  { %368 = dma.done.wait [#allocation6], 4224  }
   0xf   :  { %369 = vsyncadd [#allocation6], 4294963072  ;;  %v79_v0 = vld [vmem:[#allocation2 + $0x30] sm:$0xff]  ;;  %v77_v1 = vld [vmem:[#allocation2 + $0x20] sm:$0xff]  ;;  %vm87_vm0 = vcmask 261120   ;;  %v379_v51 = vmov 0  }
  0x10   :  { %v80_v2 = vld [vmem:[#allocation2 + $0x38] sm:$0xff]  ;;  %103 = vmatpush.msra.mxu0 %v79_v0  ;;  %v78_v3 = vld [vmem:[#allocation2 + $0x28] sm:$0xff]  ;;  %v75_v4 = vld [vmem:[#allocation2 + $0x10] sm:$0xff]  ;;  %268 = vset.pattern.permute.xlu0 %v379_v51  ;;  %s246_s26 = sshll.u32 %s452_s7, 4  ;;  %vm237_vm1 = vcmask 64512   ;;  %s247_s26 = int_to_ptr.hbm [resolvable:$true] %s246_s26 }
  0x11   :  { %123 = vmatpush.msra.mxu1 %v80_v2  ;;  %v76_v5 = vld [vmem:[#allocation2 + $0x18] sm:$0xff]  ;;  %v147_v7 = vld [vmem:[#allocation5 + $0x70] sm:$0xff]  ;;  %v73_v9 = vld [vmem:[#allocation2] sm:$0xff] }
  0x12   :  { %104 = vmatpush.msra.mxu0 %v77_v1  ;;  %v148_v6 = vld [vmem:[#allocation5 + $0x78] sm:$0xff]  ;;  %v74_v10 = vld [vmem:[#allocation2 + $0x8] sm:$0xff]  ;;  %v163_v11 = vld [vmem:[#allocation5 + $0xf0] sm:$0xff] }
  0x13   :  { %124 = vmatpush.msra.mxu1 %v78_v3  ;;  %v164_v8 = vld [vmem:[#allocation5 + $0xf8] sm:$0xff]  ;;  %169 = vmatpush.msra.mxu2 %v148_v6  ;;  %v72_v12 = vld [vmem:[%s445_s0] sm:$0xff]  ;;  %v146_v13 = vld [vmem:[#allocation5 + $0x68] sm:$0xff] }
  0x14   :  { %189 = vmatpush.msra.mxu3 %v164_v8  ;;  %105 = vmatpush.msra.mxu0 %v75_v4  ;;  %v162_v14 = vld [vmem:[#allocation5 + $0xe8] sm:$0xff]  ;;  %v145_v15 = vld [vmem:[#allocation5 + $0x60] sm:$0xff]  ;;  %v144_v17 = vld [vmem:[#allocation5 + $0x58] sm:$0xff] }
  0x15   :  { %125 = vmatpush.msra.mxu1 %v76_v5  ;;  %170 = vmatpush.msra.mxu2 %v147_v7  ;;  %v161_v16 = vld [vmem:[#allocation5 + $0xe0] sm:$0xff]  ;;  %v160_v18 = vld [vmem:[#allocation5 + $0xd8] sm:$0xff]  ;;  %v143_v19 = vld [vmem:[#allocation5 + $0x50] sm:$0xff] }
  0x16   :  { %190 = vmatpush.msra.mxu3 %v163_v11  ;;  %106 = vmatpush.msra.mxu0 %v73_v9  ;;  %v159_v20 = vld [vmem:[#allocation5 + $0xd0] sm:$0xff]  ;;  %v142_v21 = vld [vmem:[#allocation5 + $0x48] sm:$0xff]  ;;  %v141_v23 = vld [vmem:[#allocation5 + $0x40] sm:$0xff] }
  0x17   :  { %126 = vmatpush.msra.mxu1 %v74_v10  ;;  %257 = vmatmul.msk.f32.vlgmr.msra.gmra.mxu0 %vm87_vm0, %v72_v12  ;;  %v158_v22 = vld [vmem:[#allocation5 + $0xc8] sm:$0xff]  ;;  %v157_v24 = vld [vmem:[#allocation5 + $0xc0] sm:$0xff]  ;;  %v140_v25 = vld [vmem:[#allocation5 + $0x38] sm:$0xff] }
  0x18   :  { %258 = vmatmul.msk.f32.vlgmr.msra.gmra.mxu1 %vm87_vm0, %v72_v12  ;;  %171 = vmatpush.msra.mxu2 %v146_v13  ;;  %v156_v26 = vld [vmem:[#allocation5 + $0xb8] sm:$0xff]  ;;  %v139_v27 = vld [vmem:[#allocation5 + $0x30] sm:$0xff]  ;;  %v138_v29 = vld [vmem:[#allocation5 + $0x28] sm:$0xff] }
  0x19   :  { %191 = vmatpush.msra.mxu3 %v162_v14  ;;  %v155_v28 = vld [vmem:[#allocation5 + $0xb0] sm:$0xff]  ;;  %v154_v30 = vld [vmem:[#allocation5 + $0xa8] sm:$0xff]  ;;  %v137_v31 = vld [vmem:[#allocation5 + $0x20] sm:$0xff] }
  0x1a   :  { %172 = vmatpush.msra.mxu2 %v145_v15  ;;  %v153_v32 = vld [vmem:[#allocation5 + $0xa0] sm:$0xff]  ;;  %v136_v33 = vld [vmem:[#allocation5 + $0x18] sm:$0xff]  ;;  %v135_v34 = vld [vmem:[#allocation5 + $0x10] sm:$0xff] }
  0x1b   :  { %192 = vmatpush.msra.mxu3 %v161_v16  ;;  %v152_v35 = vld [vmem:[#allocation5 + $0x98] sm:$0xff]  ;;  %v134_v36 = vld [vmem:[#allocation5 + $0x8] sm:$0xff]  ;;  %v151_v37 = vld [vmem:[#allocation5 + $0x90] sm:$0xff] }
  0x1c   :  { %173 = vmatpush.msra.mxu2 %v144_v17  ;;  %v133_v38 = vld [vmem:[#allocation5] sm:$0xff]  ;;  %v150_v39 = vld [vmem:[#allocation5 + $0x88] sm:$0xff] }
  0x1d   :  { %193 = vmatpush.msra.mxu3 %v160_v18  ;;  %v149_v40 = vld [vmem:[#allocation5 + $0x80] sm:$0xff] }
  0x1e   :  { %174 = vmatpush.msra.mxu2 %v143_v19  ;;  %v81_v41 = vld [vmem:[%s447_s2] sm:$0x3]  ;;  %s380_s2 = smov [#allocation8]  }
  0x1f   :  { %194 = vmatpush.msra.mxu3 %v159_v20  ;;  %v83_v42 = vperm.slane %v81_v41, 0  ;;  %v84_v43 = vperm.slane %v81_v41, 1  ;;  %v211_v50 = vld [vmem:[%s451_s6] sm:$0xff]  ;;  %s244_s24 = sshll.u32 %s380_s2, 4  ;;  %s245_s24 = int_to_ptr.vmem [resolvable:$true] %s244_s24 }
  0x20   :  { %175 = vmatpush.msra.mxu2 %v142_v21  ;;  %214 = vperm.xlu0 %268, %v211_v50   ;;  %v269_v52 = vld [vmem:[%s449_s4] ss:$0 sm:$0xff] }
  0x21   :  { %195 = vmatpush.msra.mxu3 %v158_v22  ;;  %v210_v58 = vld [vmem:[#allocation7] sm:$0xff] }
  0x22   :  { %176 = vmatpush.msra.mxu2 %v141_v23 }
  0x23   :  { %196 = vmatpush.msra.mxu3 %v157_v24 }
  0x24   :  { %177 = vmatpush.msra.mxu2 %v140_v25 }
  0x25   :  { %197 = vmatpush.msra.mxu3 %v156_v26 }
  0x26   :  { %178 = vmatpush.msra.mxu2 %v139_v27 }
  0x27   :  { %198 = vmatpush.msra.mxu3 %v155_v28 }
  0x28   :  { %179 = vmatpush.msra.mxu2 %v138_v29 }
  0x29   :  { %199 = vmatpush.msra.mxu3 %v154_v30 }
  0x2a   :  { %180 = vmatpush.msra.mxu2 %v137_v31 }
  0x2b   :  { %200 = vmatpush.msra.mxu3 %v153_v32 }
  0x2c   :  { %181 = vmatpush.msra.mxu2 %v136_v33 }
  0x2d   :  { %201 = vmatpush.msra.mxu3 %v152_v35 }
  0x2e   :  { %182 = vmatpush.msra.mxu2 %v135_v34 }
  0x2f   :  { %202 = vmatpush.msra.mxu3 %v151_v37 }
  0x30   :  { %183 = vmatpush.msra.mxu2 %v134_v36 }
  0x31   :  { %203 = vmatpush.msra.mxu3 %v150_v39 }
  0x32   :  { %184 = vmatpush.msra.mxu2 %v133_v38 }
  0x33   :  { %204 = vmatpush.msra.mxu3 %v149_v40 }
  0x92   :  { %v215_v59 = vpop.permute.xlu0 %214 }
  0x94   :  { %v108_v44 = vpop.f32.mrf.mxu0 }
  0x95   :  { %v128_v45 = vpop.f32.mrf.mxu1  ;;  %v109_v46 = vadd.f32 %v108_v44, %v83_v42 }
  0x96   :  { %v129_v47 = vadd.f32 %v128_v45, %v84_v43 }
  0x97   :  { %v131_v48 = vmax.f32 %v109_v46, 0.0 }
  0x98   :  { %v132_v49 = vmax.f32 %v129_v47, 0.0 }
  0x99   :  { %185 = vmatmul.f32.vlgmr.msra.gmra.mxu2 %v131_v48 }
  0x9a   :  { %205 = vmatmul.f32.vlgmr.msra.gmra.mxu3 %v132_v49 }
 0x11c   :  { %v186_v53 = vpop.f32.mrf.mxu2 }
 0x11d   :  { %v206_v54 = vpop.f32.mrf.mxu3  ;;  %v187_v55 = vadd.f32 %v269_v52, %v186_v53 }
 0x11f   :  { %v207_v56 = vadd.f32 %v206_v54, %v187_v55 }
 0x121   :  { %v209_v57 = vmax.f32 %v207_v56, 0.0 }
 0x123   :  { %232 = vmatpush.xpose.msrb.mxu0 %v209_v57 }
 0x126   :  { %233 = vmatmul.f32.vlgmr.msrb.gmra.mxu0 %v210_v58 }
 0x1a3   :  { %v234_v60 = vpop.f32.mrf.mxu0 }
 0x1a4   :  { %v235_v61 = vadd.f32 %v234_v60, %v215_v59 }
 0x1a6   :  { %238 = vst.msk [vmem:[#allocation8] sm:$0xff] %vm237_vm1, %v235_v61 }
 0x1a7   :  { %249 = dma.vmem_to_hbm [thread:$0]  %s245_s24, 128, %s247_s26, [#allocation4]  }
 0x1a8   :  { %370 = dma.done.wait [#allocation4], 128  }
 0x1a9   :  { %371 = vsyncadd [#allocation4], 4294967168 }
 0x1aa   :  { %254 = vsyncpa [#allocation3], 1 }
 0x1ab   :  { %255 = vsyncpa [#allocation6], 1 }
 0x1ac   :  { %256 = vsyncpa [#allocation4], 1 }

</bundles_post_ra>
